<compile_context>
chip_gen: v5e
topology: v5e:2x2
jax: 0.10.0
libtpu: 0.0.40
codegen_flags: <defaults>
</compile_context>

<pallas_src>
import functools

import jax
import jax.numpy as jnp
from jax.experimental import pallas as pl
from jax.experimental.pallas import tpu as pltpu


def _round_up(n, m):
    return ((n + m - 1) // m) * m


def _batch_dim_semantics():
    """CORE_PARALLEL on v7x (2 TensorCores/chip) so both TCs take grid steps;
    plain "parallel" everywhere else (single-TC chips / older jax / interpret)."""
    core_parallel = getattr(pltpu, "CORE_PARALLEL", None)
    try:
        dev = jax.devices()[0]
        on_v7 = dev.platform == "tpu" and "v7" in getattr(dev, "device_kind", "").lower()
    except Exception:
        on_v7 = False
    if core_parallel is not None and on_v7:
        return (core_parallel,)
    return ("parallel",)


def actor_critic_kernel(x_ref, w1_ref, b1_ref, w2_ref, b2_ref, out_ref, *, num_outputs):
    # num_outputs is a static Python int (baked via functools.partial).
    x = x_ref[...]                                              # (bT, num_inputs) f32

    # ---- fused layer 1: [critic_hidden | actor_hidden] -----------------------
    h = jnp.dot(x, w1_ref[...], preferred_element_type=jnp.float32) + b1_ref[...]
    h = jnp.maximum(h, 0.0)                                     # (bT, 2H)

    # ---- fused layer 2 (block-diagonal, OUT_COLS lanes) -----------------------
    #   cols [0:num_outputs) = actor logits, col num_outputs = critic value
    z = jnp.dot(h, w2_ref[...], preferred_element_type=jnp.float32) + b2_ref[...]

    # ---- masked, numerically-stable softmax over the logit columns -----------
    col = jax.lax.broadcasted_iota(jnp.int32, z.shape, 1)
    is_logit = col < num_outputs
    masked = jnp.where(is_logit, z, -jnp.inf)
    m = jnp.max(masked, axis=-1, keepdims=True)
    e = jnp.exp(masked - m)                                     # exp(-inf)=0 on non-logit lanes
    denom = jnp.sum(e, axis=-1, keepdims=True)
    probs = e / denom                                           # exact divide: 1e-5 parity

    # probs in logit cols, raw value (and zeros) elsewhere — one narrow store.
    out_ref[...] = jnp.where(is_logit, probs, z).astype(out_ref.dtype)


def pack_params(p, num_outputs, out_cols=None):
    """Pack 8 torch-style tensors into 4 slabs consumed by the kernel (arrays only)."""
    H = p["wc1"].shape[1]
    if out_cols is None:
        out_cols = max(8, _round_up(num_outputs + 1, 8))        # narrow output slab
    w1 = jnp.concatenate([p["wc1"], p["wa1"]], axis=1)          # (in, 2H): [critic | actor]
    b1 = jnp.concatenate([p["bc1"], p["ba1"]], axis=1)          # (1, 2H)

    w2 = jnp.zeros((2 * H, out_cols), jnp.float32)
    w2 = w2.at[H:, :num_outputs].set(p["wa2"])                  # actor rows -> logit cols
    w2 = w2.at[:H, num_outputs].set(p["wc2"][:, 0])             # critic rows -> value col
    b2 = jnp.zeros((1, out_cols), jnp.float32)
    b2 = b2.at[:, :num_outputs].set(p["ba2"])
    b2 = b2.at[:, num_outputs].set(p["bc2"][0, 0])
    return dict(w1=w1, b1=b1, w2=w2, b2=b2)


def actor_critic_forward(x, packed, *, num_outputs, block_b=1024):
    """x: (B, num_inputs) f32. packed: output of pack_params (arrays only).
    num_outputs must be a static Python int. Returns (probs, value)."""
    B, num_inputs = x.shape
    w1, b1, w2, b2 = packed["w1"], packed["b1"], packed["w2"], packed["b2"]
    out_cols = w2.shape[1]

    # Batch tile: big (per-grid-step overhead dominates the tiny per-tile work),
    # multiple of 8 sublanes, capped at 2048 so double-buffered x/out tiles fit
    # v5e's 16 MiB scoped-VMEM default without extra flags.
    b_tile = max(8, min(block_b, 2048, _round_up(B, 8)))
    # Keep >= 2 grid steps when the batch allows it so v7x's second TensorCore
    # gets work and the pipeline has something to overlap.
    if B > 8 and b_tile >= _round_up(B, 8):
        b_tile = max(8, _round_up((B + 1) // 2, 8))
    B_pad = _round_up(B, b_tile)
    if B_pad != B:
        x = jnp.pad(x, ((0, B_pad - B), (0, 0)))
    grid = (B_pad // b_tile,)

    kernel = functools.partial(actor_critic_kernel, num_outputs=num_outputs)

    out = pl.pallas_call(
        kernel,
        out_shape=jax.ShapeDtypeStruct((B_pad, out_cols), jnp.float32),
        grid=grid,
        in_specs=[
            pl.BlockSpec((b_tile, num_inputs), lambda i: (i, 0)),   # x: batch-tiled
            pl.BlockSpec(w1.shape, lambda i: (0, 0)),               # weights: VMEM-resident
            pl.BlockSpec(b1.shape, lambda i: (0, 0)),
            pl.BlockSpec(w2.shape, lambda i: (0, 0)),
            pl.BlockSpec(b2.shape, lambda i: (0, 0)),
        ],
        out_specs=pl.BlockSpec((b_tile, out_cols), lambda i: (i, 0)),
        compiler_params=pltpu.CompilerParams(
            dimension_semantics=_batch_dim_semantics(),
        ),
    )(x, w1, b1, w2, b2)

    probs = out[:B, :num_outputs]
    value = out[:B, num_outputs:num_outputs + 1]
    return probs, value


def init_params(key, num_inputs, num_outputs, hidden_size):
    """Deterministic synthetic init (uniform like torch's default), stored as (in, out)."""
    ks = jax.random.split(key, 8)

    def lin(kw, kb, fan_in, fan_out):
        bound = 1.0 / jnp.sqrt(jnp.float32(fan_in))
        w = jax.random.uniform(kw, (fan_in, fan_out), jnp.float32, -bound, bound)
        b = jax.random.uniform(kb, (1, fan_out), jnp.float32, -bound, bound)
        return w, b

    wc1, bc1 = lin(ks[0], ks[1], num_inputs, hidden_size)
    wc2, bc2 = lin(ks[2], ks[3], hidden_size, 1)
    wa1, ba1 = lin(ks[4], ks[5], num_inputs, hidden_size)
    wa2, ba2 = lin(ks[6], ks[7], hidden_size, num_outputs)
    return dict(wc1=wc1, bc1=bc1, wc2=wc2, bc2=bc2,
                wa1=wa1, ba1=ba1, wa2=wa2, ba2=ba2)


def reference_forward(x, p):
    """Pure-JAX reference matching the PyTorch module semantics (full f32 matmuls)."""
    hi = jax.lax.Precision.HIGHEST
    h_c = jnp.maximum(jnp.dot(x, p["wc1"], precision=hi) + p["bc1"], 0.0)
    value = jnp.dot(h_c, p["wc2"], precision=hi) + p["bc2"]
    h_a = jnp.maximum(jnp.dot(x, p["wa1"], precision=hi) + p["ba1"], 0.0)
    logits = jnp.dot(h_a, p["wa2"], precision=hi) + p["ba2"]
    probs = jax.nn.softmax(logits, axis=1)
    return probs, value


if __name__ == "__main__":
    num_inputs, num_outputs, hidden_size = 16, 4, 32
    batch = 256            # >1 batch tile -> exercises the pipelined grid

    key = jax.random.PRNGKey(0)
    k_x, k_p = jax.random.split(key)
    x = jax.random.normal(k_x, (batch, num_inputs), jnp.float32)
    params = init_params(k_p, num_inputs, num_outputs, hidden_size)
    packed = pack_params(params, num_outputs)

    fwd = jax.jit(actor_critic_forward, static_argnames=("num_outputs", "block_b"))
    probs, value = fwd(x, packed, num_outputs=num_outputs)
    jax.block_until_ready((probs, value))

    probs_ref, value_ref = reference_forward(x, params)
    assert probs.shape == (batch, num_outputs)
    assert value.shape == (batch, 1)
    assert jnp.allclose(probs, probs_ref, atol=1e-5, rtol=1e-5)
    assert jnp.allclose(value, value_ref, atol=1e-5, rtol=1e-5)
    assert jnp.allclose(jnp.sum(probs, axis=1), 1.0, atol=1e-5)

    print("KERNEL_OK")
</pallas_src>

<mosaic_0001>
module attributes {stable_mosaic.version = 11 : i64} {
  func.func @actor_critic_kernel(%arg0: i32, %arg1: memref<128x16xf32, #tpu.memory_space<vmem>>, %arg2: memref<16x64xf32, #tpu.memory_space<vmem>>, %arg3: memref<1x64xf32, #tpu.memory_space<vmem>>, %arg4: memref<64x8xf32, #tpu.memory_space<vmem>>, %arg5: memref<1x8xf32, #tpu.memory_space<vmem>>, %arg6: memref<128x8xf32, #tpu.memory_space<vmem>>) attributes {dimension_semantics = [#tpu.dimension_semantics<parallel>], iteration_bounds = array<i64: 2>, scalar_prefetch = 0 : i64, scratch_operands = 0 : i64, tpu.core_type = #tpu.core_type<tc>, window_params = [{transform_indices = @transform_0, window_bounds = array<i64: 128, 16>}, {pipeline_mode = #tpu.pipeline_mode<synchronous>, transform_indices = @transform_1, window_bounds = array<i64: 16, 64>}, {pipeline_mode = #tpu.pipeline_mode<synchronous>, transform_indices = @transform_2, window_bounds = array<i64: 1, 64>}, {pipeline_mode = #tpu.pipeline_mode<synchronous>, transform_indices = @transform_3, window_bounds = array<i64: 64, 8>}, {pipeline_mode = #tpu.pipeline_mode<synchronous>, transform_indices = @transform_4, window_bounds = array<i64: 1, 8>}, {transform_indices = @transform_5, window_bounds = array<i64: 128, 8>}]} {
    %c0 = arith.constant 0 : index
    %c0_0 = arith.constant 0 : index
    %0 = vector.load %arg1[%c0, %c0_0] : memref<128x16xf32, #tpu.memory_space<vmem>>, vector<128x16xf32>
    %c0_1 = arith.constant 0 : index
    %c0_2 = arith.constant 0 : index
    %1 = vector.load %arg2[%c0_1, %c0_2] : memref<16x64xf32, #tpu.memory_space<vmem>>, vector<16x64xf32>
    %cst = arith.constant dense<0.000000e+00> : vector<128x64xf32>
    %2 = tpu.matmul %0, %1, %cst {dimension_numbers = #tpu.dot_dimension_numbers<[1], [0], [0], [1], [0, 0, 1, 1], [], []>} : vector<128x16xf32>, vector<16x64xf32>, vector<128x64xf32> -> vector<128x64xf32>
    %c0_3 = arith.constant 0 : index
    %c0_4 = arith.constant 0 : index
    %3 = vector.load %arg3[%c0_3, %c0_4] : memref<1x64xf32, #tpu.memory_space<vmem>>, vector<1x64xf32>
    %4 = vector.broadcast %3 : vector<1x64xf32> to vector<128x64xf32>
    %5 = arith.addf %2, %4 : vector<128x64xf32>
    %cst_5 = arith.constant 0.000000e+00 : f32
    %6 = vector.broadcast %cst_5 : f32 to vector<128x64xf32>
    %7 = arith.maximumf %5, %6 : vector<128x64xf32>
    %c0_6 = arith.constant 0 : index
    %c0_7 = arith.constant 0 : index
    %8 = vector.load %arg4[%c0_6, %c0_7] : memref<64x8xf32, #tpu.memory_space<vmem>>, vector<64x8xf32>
    %cst_8 = arith.constant dense<0.000000e+00> : vector<128x8xf32>
    %9 = tpu.matmul %7, %8, %cst_8 {dimension_numbers = #tpu.dot_dimension_numbers<[1], [0], [0], [1], [0, 0, 1, 1], [], []>} : vector<128x64xf32>, vector<64x8xf32>, vector<128x8xf32> -> vector<128x8xf32>
    %c0_9 = arith.constant 0 : index
    %c0_10 = arith.constant 0 : index
    %10 = vector.load %arg5[%c0_9, %c0_10] : memref<1x8xf32, #tpu.memory_space<vmem>>, vector<1x8xf32>
    %11 = vector.broadcast %10 : vector<1x8xf32> to vector<128x8xf32>
    %12 = arith.addf %9, %11 : vector<128x8xf32>
    %13 = tpu.iota {dimensions = array<i32: 1>} : vector<128x8xi32>
    %c4_i32 = arith.constant 4 : i32
    %14 = vector.broadcast %c4_i32 : i32 to vector<128x8xi32>
    %15 = arith.cmpi slt, %13, %14 : vector<128x8xi32>
    %cst_11 = arith.constant 0xFF800000 : f32
    %16 = vector.broadcast %cst_11 : f32 to vector<128x8xf32>
    %17 = arith.select %15, %12, %16 : vector<128x8xi1>, vector<128x8xf32>
    %cst_12 = arith.constant dense<0xFF800000> : vector<128xf32>
    %18 = vector.multi_reduction <maximumf>, %17, %cst_12 [1] : vector<128x8xf32> to vector<128xf32>
    %19 = vector.shape_cast %18 : vector<128xf32> to vector<128x1xf32>
    %20 = vector.broadcast %19 : vector<128x1xf32> to vector<128x8xf32>
    %21 = arith.subf %17, %20 : vector<128x8xf32>
    %22 = math.exp %21 : vector<128x8xf32>
    %cst_13 = arith.constant dense<0.000000e+00> : vector<128xf32>
    %23 = vector.multi_reduction <add>, %22, %cst_13 [1] : vector<128x8xf32> to vector<128xf32>
    %24 = vector.shape_cast %23 : vector<128xf32> to vector<128x1xf32>
    %25 = vector.broadcast %24 : vector<128x1xf32> to vector<128x8xf32>
    %26 = arith.divf %22, %25 : vector<128x8xf32>
    %27 = arith.select %15, %26, %12 : vector<128x8xi1>, vector<128x8xf32>
    %c0_14 = arith.constant 0 : index
    %c0_15 = arith.constant 0 : index
    %28 = vector.load %arg6[%c0_14, %c0_15] : memref<128x8xf32, #tpu.memory_space<vmem>>, vector<128x8xf32>
    tpu.vector_store %arg6[%c0_14, %c0_15], %27 {strides = array<i32>} : memref<128x8xf32, #tpu.memory_space<vmem>>, vector<128x8xf32>,
    return
  }
  func.func @transform_0(%arg0: i32) -> (i32, i32) {
    %c0_i32 = arith.constant 0 : i32
    %c0_i32_0 = arith.constant 0 : i32
    return %arg0, %c0_i32 : i32, i32
  }
  func.func @transform_1(%arg0: i32) -> (i32, i32) {
    %c0_i32 = arith.constant 0 : i32
    %c0_i32_0 = arith.constant 0 : i32
    %c0_i32_1 = arith.constant 0 : i32
    return %c0_i32, %c0_i32_0 : i32, i32
  }
  func.func @transform_2(%arg0: i32) -> (i32, i32) {
    %c0_i32 = arith.constant 0 : i32
    %c0_i32_0 = arith.constant 0 : i32
    %c0_i32_1 = arith.constant 0 : i32
    return %c0_i32, %c0_i32_0 : i32, i32
  }
  func.func @transform_3(%arg0: i32) -> (i32, i32) {
    %c0_i32 = arith.constant 0 : i32
    %c0_i32_0 = arith.constant 0 : i32
    %c0_i32_1 = arith.constant 0 : i32
    return %c0_i32, %c0_i32_0 : i32, i32
  }
  func.func @transform_4(%arg0: i32) -> (i32, i32) {
    %c0_i32 = arith.constant 0 : i32
    %c0_i32_0 = arith.constant 0 : i32
    %c0_i32_1 = arith.constant 0 : i32
    return %c0_i32, %c0_i32_0 : i32, i32
  }
  func.func @transform_5(%arg0: i32) -> (i32, i32) {
    %c0_i32 = arith.constant 0 : i32
    %c0_i32_0 = arith.constant 0 : i32
    return %arg0, %c0_i32 : i32, i32
  }
}

</mosaic_0001>

<bundles_post_ra>
// kernel: actor_critic_forward.1
= control target key start
LH: loop header
LB: loop body
LE: loop exit
PB: predicated region body
PF: predicated region fallthrough
CT: control target
= control target key end

     0   :  { %s1163_s18 = smov 0   ;;  %s1634_s0 = inlined_call_operand.vmem [shape: f32[256,16], index: 0, kind: input, shape index: {}]   ;;  %s1635_s1 = inlined_call_operand.vmem [shape: f32[16,64], index: 1, kind: input, shape index: {}]   ;;  %s1636_s2 = inlined_call_operand.vmem [shape: f32[1,64], index: 2, kind: input, shape index: {}]   ;;  %s1637_s3 = inlined_call_operand.vmem [shape: f32[64,8], index: 3, kind: input, shape index: {}]   ;;  %s1638_s4 = inlined_call_operand.vmem [shape: f32[1,8], index: 4, kind: input, shape index: {}]   ;;  %s1639_s5 = inlined_call_operand.vmem [shape: f32[256,8], index: 5, kind: output, shape index: {}]  }
   0x1 LB: > { %s998_s19 = sadd.s32 4294967295, %s1131_s18   ;;  %p1002_p0 = scmp.ge.s32.totalorder %s1131_s18, 1  ;;  %s1131_s18 = sphi %s1163_s18, %s15_s18  }
   0x2   : > { %p188_p1 = scmp.lt.s32.totalorder %s1131_s18, 3 }
   0x4   : > { %p189_p2 = pnand %p1002_p0, %p188_p1 }
   0x5   : > { %s1003_s24 = sshll.u32 (!%p189_p2), %s998_s19, 4 }
   0x6   : > { %192 = sbr.rel (%p189_p2) target bundleno = 666 (0x29a), region = 40  ;;  %p217_p3 = scmp.lt.s32.totalorder (!%p189_p2), %s1003_s24, 31 }
   0xb   : > { %v245_v0 = vld [vmem:[%s1635_s1 + $0x8] sm:$0xff]  ;;  %v244_v1 = vld [vmem:[%s1635_s1] sm:$0xff]  ;;  %s1641_s24 = smov (!%p217_p3, %s1003_s24), 31  ;;  %vm250_vm0 = vcmask 130048   ;;  %v387_v12 = vld [vmem:[%s1637_s3 + $0x38] sm:$0xff]  ;;  %vm392_vm1 = vcmask 523264  }
   0xc   : > { %313 = vmatpush.msra.mxu0 %v245_v0  ;;  %1041 = vmatpush.msra.mxu3 %v245_v0  ;;  %s1004_s25 = sshll.u32 %s1641_s24, 3  ;;  %v386_v13 = vld [vmem:[%s1637_s3 + $0x30] sm:$0xff]  ;;  %v385_v14 = vld [vmem:[%s1637_s3 + $0x28] sm:$0xff]  ;;  %v384_v16 = vld [vmem:[%s1637_s3 + $0x20] sm:$0xff]  ;;  %vm525_vm3 = vcmask 64512  }
   0xd   : > { %s1185_s28 = scalar_lea.vmem %s1634_s0, %s1004_s25  ;;  %449 = vmatpush.msra.mxu1 %v387_v12  ;;  %1043 = vmatpush.msra.mxu2 %v387_v12  ;;  %v383_v18 = vld [vmem:[%s1637_s3 + $0x18] sm:$0xff]  ;;  %v382_v23 = vld [vmem:[%s1637_s3 + $0x10] sm:$0xff]  ;;  %v381_v24 = vld [vmem:[%s1637_s3 + $0x8] sm:$0xff]  ;;  %s1533_s29 = scalar_lea.vmem %s1639_s5, %s1004_s25 }
   0xe   : > { %314 = vmatpush.msra.mxu0 %v244_v1  ;;  %1042 = vmatpush.msra.mxu3 %v244_v1  ;;  %v228_v2 = vld [vmem:[%s1185_s28] sm:$0xff]  ;;  %v229_v3 = vld [vmem:[%s1185_s28 + $0x8] sm:$0xff]  ;;  %v230_v4 = vld [vmem:[%s1185_s28 + $0x10] sm:$0xff] }
   0xf   : > { %1007 = vmatmul.msk.f32.vlgmr.msra.gmra.mxu0 %vm250_vm0, %v228_v2  ;;  %v231_v5 = vld [vmem:[%s1185_s28 + $0x18] sm:$0xff]  ;;  %v232_v6 = vld [vmem:[%s1185_s28 + $0x20] sm:$0xff]  ;;  %v237_v7 = vld [vmem:[%s1185_s28 + $0x48] sm:$0xff]  ;;  %450 = vmatpush.msra.mxu1 %v386_v13 }
  0x10   : > { %1016 = vmatmul.msk.f32.vlgmr.msra.gmra.mxu3 %vm250_vm0, %v237_v7  ;;  %v233_v8 = vld [vmem:[%s1185_s28 + $0x28] sm:$0xff]  ;;  %v238_v9 = vld [vmem:[%s1185_s28 + $0x50] sm:$0xff]  ;;  %v239_v11 = vld [vmem:[%s1185_s28 + $0x58] sm:$0xff]  ;;  %1044 = vmatpush.msra.mxu2 %v386_v13 }
  0x11   : > { %v234_v10 = vld [vmem:[%s1185_s28 + $0x30] sm:$0xff]  ;;  %v235_v15 = vld [vmem:[%s1185_s28 + $0x38] sm:$0xff]  ;;  %v240_v17 = vld [vmem:[%s1185_s28 + $0x60] sm:$0xff]  ;;  %451 = vmatpush.msra.mxu1 %v385_v14 }
  0x12   : > { %1045 = vmatpush.msra.mxu2 %v385_v14  ;;  %v236_v19 = vld [vmem:[%s1185_s28 + $0x40] sm:$0xff]  ;;  %v241_v20 = vld [vmem:[%s1185_s28 + $0x68] sm:$0xff]  ;;  %v242_v21 = vld [vmem:[%s1185_s28 + $0x70] sm:$0xff] }
  0x13   : > { %452 = vmatpush.msra.mxu1 %v384_v16  ;;  %v243_v22 = vld [vmem:[%s1185_s28 + $0x78] sm:$0xff]  ;;  %v380_v25 = vld [vmem:[%s1637_s3] sm:$0xff] }
  0x14   : > { %1046 = vmatpush.msra.mxu2 %v384_v16  ;;  %v1246_v26 = vld [vmem:[%s1636_s2] ss:$0 sm:$0xff] }
  0x15   : > { %453 = vmatpush.msra.mxu1 %v383_v18  ;;  %v1285_v13 = vld [vmem:[%s1638_s4] ss:$0 sm:$0xff] }
  0x16   : > { %1047 = vmatpush.msra.mxu2 %v383_v18 }
  0x17   : > { %1008 = vmatmul.msk.f32.gmra.mxu0 %vm250_vm0, %v229_v3  ;;  %454 = vmatpush.msra.mxu1 %v382_v23 }
  0x18   : > { %1017 = vmatmul.msk.f32.gmra.mxu3 %vm250_vm0, %v238_v9  ;;  %1048 = vmatpush.msra.mxu2 %v382_v23 }
  0x19   : > { %455 = vmatpush.msra.mxu1 %v381_v24 }
  0x1a   : > { %1049 = vmatpush.msra.mxu2 %v381_v24 }
  0x1b   : > { %456 = vmatpush.msra.mxu1 %v380_v25 }
  0x1c   : > { %1050 = vmatpush.msra.mxu2 %v380_v25 }
  0x1f   : > { %1009 = vmatmul.msk.f32.gmra.mxu0 %vm250_vm0, %v230_v4 }
  0x20   : > { %1018 = vmatmul.msk.f32.gmra.mxu3 %vm250_vm0, %v239_v11  ;;  %v506_v11 = vlaneseq }
  0x22   : > { %v1280_v12 = vand.u32 127, %v506_v11 }
  0x24   : > { %vm508_vm2 = vcmp.lt.s32.totalorder %v1280_v12, 4 }
  0x27   : > { %1010 = vmatmul.msk.f32.gmra.mxu0 %vm250_vm0, %v231_v5 }
  0x28   : > { %1019 = vmatmul.msk.f32.gmra.mxu3 %vm250_vm0, %v240_v17 }
  0x2f   : > { %1011 = vmatmul.msk.f32.gmra.mxu0 %vm250_vm0, %v232_v6 }
  0x30   : > { %1020 = vmatmul.msk.f32.gmra.mxu3 %vm250_vm0, %v241_v20 }
  0x37   : > { %1012 = vmatmul.msk.f32.gmra.mxu0 %vm250_vm0, %v233_v8 }
  0x38   : > { %1021 = vmatmul.msk.f32.gmra.mxu3 %vm250_vm0, %v242_v21 }
  0x3f   : > { %1013 = vmatmul.msk.f32.gmra.mxu0 %vm250_vm0, %v234_v10 }
  0x40   : > { %1022 = vmatmul.msk.f32.gmra.mxu3 %vm250_vm0, %v243_v22 }
  0x47   : > { %1014 = vmatmul.msk.f32.gmra.mxu0 %vm250_vm0, %v235_v15 }
  0x4f   : > { %1015 = vmatmul.msk.f32.gmra.mxu0 %vm250_vm0, %v236_v19 }
  0x8c   : > { %v316_v27 = vpop.f32.mrf.mxu0 }
  0x8d   : > { %v317_v28 = vadd.f32 %v1246_v26, %v316_v27 }
  0x8f   : > { %v364_v29 = vmax.f32 %v317_v28, 0.0 }
  0x91   : > { %1023 = vmatmul.msk.f32.vlgmr.msra.gmra.mxu1 %vm392_vm1, %v364_v29 }
  0x93   : > { %v343_v48 = vpop.f32.mrf.mxu3 }
  0x94   : > { %v319_v30 = vpop.f32.mrf.mxu0  ;;  %v344_v56 = vadd.f32 %v1246_v26, %v343_v48 }
  0x95   : > { %v320_v31 = vadd.f32 %v1246_v26, %v319_v30 }
  0x96   : > { %v373_v57 = vmax.f32 %v344_v56, 0.0 }
  0x97   : > { %v365_v32 = vmax.f32 %v320_v31, 0.0 }
  0x99   : > { %1024 = vmatmul.msk.f32.gmra.mxu1 %vm392_vm1, %v365_v32 }
  0x9b   : > { %v346_v53 = vpop.f32.mrf.mxu3 }
  0x9c   : > { %v322_v33 = vpop.f32.mrf.mxu0  ;;  %v347_v59 = vadd.f32 %v1246_v26, %v346_v53 }
  0x9d   : > { %v323_v34 = vadd.f32 %v1246_v26, %v322_v33 }
  0x9e   : > { %v374_v60 = vmax.f32 %v347_v59, 0.0 }
  0x9f   : > { %v366_v35 = vmax.f32 %v323_v34, 0.0 }
  0xa1   : > { %1025 = vmatmul.msk.f32.gmra.mxu1 %vm392_vm1, %v366_v35 }
  0xa3   : > { %v349_v58 = vpop.f32.mrf.mxu3 }
  0xa4   : > { %v325_v36 = vpop.f32.mrf.mxu0  ;;  %v350_v62 = vadd.f32 %v1246_v26, %v349_v58 }
  0xa5   : > { %v326_v37 = vadd.f32 %v1246_v26, %v325_v36 }
  0xa6   : > { %v375_v63 = vmax.f32 %v350_v62, 0.0 }
  0xa7   : > { %v367_v38 = vmax.f32 %v326_v37, 0.0 }
  0xa9   : > { %1026 = vmatmul.msk.f32.gmra.mxu1 %vm392_vm1, %v367_v38 }
  0xab   : > { %v352_v61 = vpop.f32.mrf.mxu3 }
  0xac   : > { %v328_v39 = vpop.f32.mrf.mxu0  ;;  %v353_v0 = vadd.f32 %v1246_v26, %v352_v61 }
  0xad   : > { %v329_v40 = vadd.f32 %v1246_v26, %v328_v39 }
  0xae   : > { %v376_v2 = vmax.f32 %v353_v0, 0.0 }
  0xaf   : > { %v368_v41 = vmax.f32 %v329_v40, 0.0 }
  0xb1   : > { %1027 = vmatmul.msk.f32.gmra.mxu1 %vm392_vm1, %v368_v41 }
  0xb3   : > { %v355_v1 = vpop.f32.mrf.mxu3 }
  0xb4   : > { %v331_v42 = vpop.f32.mrf.mxu0  ;;  %v356_v3 = vadd.f32 %v1246_v26, %v355_v1 }
  0xb5   : > { %v332_v43 = vadd.f32 %v1246_v26, %v331_v42 }
  0xb6   : > { %v377_v5 = vmax.f32 %v356_v3, 0.0 }
  0xb7   : > { %v369_v44 = vmax.f32 %v332_v43, 0.0 }
  0xb9   : > { %1028 = vmatmul.msk.f32.gmra.mxu1 %vm392_vm1, %v369_v44 }
  0xbb   : > { %v358_v4 = vpop.f32.mrf.mxu3 }
  0xbc   : > { %v334_v45 = vpop.f32.mrf.mxu0  ;;  %v359_v6 = vadd.f32 %v1246_v26, %v358_v4 }
  0xbd   : > { %v335_v46 = vadd.f32 %v1246_v26, %v334_v45 }
  0xbe   : > { %v378_v7 = vmax.f32 %v359_v6, 0.0 }
  0xbf   : > { %v370_v47 = vmax.f32 %v335_v46, 0.0 }
  0xc1   : > { %1029 = vmatmul.msk.f32.gmra.mxu1 %vm392_vm1, %v370_v47 }
  0xc3   : > { %v361_v8 = vpop.f32.mrf.mxu3 }
  0xc4   : > { %v337_v49 = vpop.f32.mrf.mxu0  ;;  %v362_v9 = vadd.f32 %v1246_v26, %v361_v8 }
  0xc5   : > { %v338_v50 = vadd.f32 %v1246_v26, %v337_v49 }
  0xc6   : > { %v379_v10 = vmax.f32 %v362_v9, 0.0 }
  0xc7   : > { %v371_v51 = vmax.f32 %v338_v50, 0.0 }
  0xc9   : > { %1030 = vmatmul.msk.f32.gmra.mxu1 %vm392_vm1, %v371_v51 }
  0xcc   : > { %v340_v52 = vpop.f32.mrf.mxu0 }
  0xcd   : > { %v341_v54 = vadd.f32 %v1246_v26, %v340_v52 }
  0xcf   : > { %v372_v55 = vmax.f32 %v341_v54, 0.0 }
  0xd1   : > { %1031 = vmatmul.msk.f32.vlgmr.msra.gmra.mxu2 %vm392_vm1, %v372_v55 }
  0xd9   : > { %1032 = vmatmul.msk.f32.gmra.mxu2 %vm392_vm1, %v373_v57 }
  0xe1   : > { %1033 = vmatmul.msk.f32.gmra.mxu2 %vm392_vm1, %v374_v60 }
  0xe9   : > { %1034 = vmatmul.msk.f32.gmra.mxu2 %vm392_vm1, %v375_v63 }
  0xf1   : > { %1035 = vmatmul.msk.f32.gmra.mxu2 %vm392_vm1, %v376_v2 }
  0xf9   : > { %1036 = vmatmul.msk.f32.gmra.mxu2 %vm392_vm1, %v377_v5 }
 0x101   : > { %1037 = vmatmul.msk.f32.gmra.mxu2 %vm392_vm1, %v378_v7 }
 0x109   : > { %1038 = vmatmul.msk.f32.gmra.mxu2 %vm392_vm1, %v379_v10 }
 0x10e   : > { %v458_v14 = vpop.f32.mrf.mxu1 }
 0x10f   : > { %v1289_v15 = vadd.f32 %v1285_v13, %v458_v14 }
 0x111   : > { %v1294_v16 = vsel %vm508_vm2, %v1289_v15, -inf }
 0x112   : > { %v526_v17 = vsel %vm525_vm3, %v1294_v16, -inf }
 0x113   : > { %527 = vmax.xlane.f32.xlu0 %v526_v17 }
 0x116   : > { %v461_v18 = vpop.f32.mrf.mxu1 }
 0x117   : > { %v1299_v19 = vadd.f32 %v1285_v13, %v461_v18 }
 0x119   : > { %v1304_v20 = vsel %vm508_vm2, %v1299_v19, -inf }
 0x11a   : > { %v529_v21 = vsel %vm525_vm3, %v1304_v20, -inf }
 0x11b   : > { %530 = vmax.xlane.f32.xlu0 %v529_v21 }
 0x11e   : > { %v464_v22 = vpop.f32.mrf.mxu1 }
 0x11f   : > { %v1309_v23 = vadd.f32 %v1285_v13, %v464_v22 }
 0x121   : > { %v1314_v24 = vsel %vm508_vm2, %v1309_v23, -inf }
 0x122   : > { %v532_v25 = vsel %vm525_vm3, %v1314_v24, -inf }
 0x123   : > { %533 = vmax.xlane.f32.xlu1 %v532_v25 }
 0x126   : > { %v467_v26 = vpop.f32.mrf.mxu1 }
 0x127   : > { %v1319_v27 = vadd.f32 %v1285_v13, %v467_v26 }
 0x129   : > { %v1324_v28 = vsel %vm508_vm2, %v1319_v27, -inf }
 0x12a   : > { %v535_v29 = vsel %vm525_vm3, %v1324_v28, -inf }
 0x12b   : > { %536 = vmax.xlane.f32.xlu1 %v535_v29 }
 0x12e   : > { %v470_v30 = vpop.f32.mrf.mxu1 }
 0x12f   : > { %v1329_v31 = vadd.f32 %v1285_v13, %v470_v30 }
 0x131   : > { %v1334_v32 = vsel %vm508_vm2, %v1329_v31, -inf }
 0x132   : > { %v538_v33 = vsel %vm525_vm3, %v1334_v32, -inf }
 0x133   : > { %539 = vmax.xlane.f32.xlu2 %v538_v33 }
 0x136   : > { %v473_v34 = vpop.f32.mrf.mxu1 }
 0x137   : > { %v1339_v35 = vadd.f32 %v1285_v13, %v473_v34 }
 0x139   : > { %v1344_v36 = vsel %vm508_vm2, %v1339_v35, -inf }
 0x13a   : > { %v541_v37 = vsel %vm525_vm3, %v1344_v36, -inf }
 0x13b   : > { %542 = vmax.xlane.f32.xlu2 %v541_v37 }
 0x13e   : > { %v476_v38 = vpop.f32.mrf.mxu1 }
 0x13f   : > { %v1349_v39 = vadd.f32 %v1285_v13, %v476_v38 }
 0x141   : > { %v1354_v40 = vsel %vm508_vm2, %v1349_v39, -inf }
 0x142   : > { %v544_v41 = vsel %vm525_vm3, %v1354_v40, -inf }
 0x143   : > { %545 = vmax.xlane.f32.xlu0 %v544_v41 }
 0x146   : > { %v479_v42 = vpop.f32.mrf.mxu1 }
 0x147   : > { %v1359_v43 = vadd.f32 %v1285_v13, %v479_v42 }
 0x149   : > { %v1364_v44 = vsel %vm508_vm2, %v1359_v43, -inf }
 0x14a   : > { %v547_v45 = vsel %vm525_vm3, %v1364_v44, -inf }
 0x14b   : > { %548 = vmax.xlane.f32.xlu1 %v547_v45 }
 0x154   : > { %v482_v46 = vpop.f32.mrf.mxu2 }
 0x155   : > { %v1369_v47 = vadd.f32 %v1285_v13, %v482_v46 }
 0x157   : > { %v1374_v48 = vsel %vm508_vm2, %v1369_v47, -inf }
 0x158   : > { %v550_v49 = vsel %vm525_vm3, %v1374_v48, -inf }
 0x159   : > { %551 = vmax.xlane.f32.xlu2 %v550_v49 }
 0x15c   : > { %v485_v50 = vpop.f32.mrf.mxu2 }
 0x15d   : > { %v1379_v51 = vadd.f32 %v1285_v13, %v485_v50 }
 0x15f   : > { %v1384_v52 = vsel %vm508_vm2, %v1379_v51, -inf }
 0x160   : > { %v553_v53 = vsel %vm525_vm3, %v1384_v52, -inf }
 0x161   : > { %554 = vmax.xlane.f32.xlu0 %v553_v53 }
 0x164   : > { %v488_v54 = vpop.f32.mrf.mxu2 }
 0x165   : > { %v1389_v55 = vadd.f32 %v1285_v13, %v488_v54 }
 0x167   : > { %v1394_v56 = vsel %vm508_vm2, %v1389_v55, -inf }
 0x168   : > { %v556_v57 = vsel %vm525_vm3, %v1394_v56, -inf }
 0x169   : > { %557 = vmax.xlane.f32.xlu1 %v556_v57 }
 0x16c   : > { %v491_v58 = vpop.f32.mrf.mxu2 }
 0x16d   : > { %v1399_v59 = vadd.f32 %v1285_v13, %v491_v58 }
 0x16f   : > { %v1404_v60 = vsel %vm508_vm2, %v1399_v59, -inf }
 0x170   : > { %v559_v61 = vsel %vm525_vm3, %v1404_v60, -inf }
 0x171   : > { %560 = vmax.xlane.f32.xlu2 %v559_v61 }
 0x174   : > { %v494_v62 = vpop.f32.mrf.mxu2 }
 0x175   : > { %v1409_v63 = vadd.f32 %v1285_v13, %v494_v62 }
 0x177   : > { %v1414_v0 = vsel %vm508_vm2, %v1409_v63, -inf }
 0x178   : > { %v562_v1 = vsel %vm525_vm3, %v1414_v0, -inf }
 0x179   : > { %563 = vmax.xlane.f32.xlu0 %v562_v1 }
 0x17c   : > { %v497_v2 = vpop.f32.mrf.mxu2 }
 0x17d   : > { %v1419_v3 = vadd.f32 %v1285_v13, %v497_v2 }
 0x17f   : > { %v1424_v4 = vsel %vm508_vm2, %v1419_v3, -inf }
 0x180   : > { %v565_v5 = vsel %vm525_vm3, %v1424_v4, -inf }
 0x181   : > { %566 = vmax.xlane.f32.xlu1 %v565_v5 }
 0x184   : > { %v500_v6 = vpop.f32.mrf.mxu2 }
 0x185   : > { %v1429_v7 = vadd.f32 %v1285_v13, %v500_v6 }
 0x186   : > { %v528_v8 = vpop.xlane.xlu0 %527 }
 0x187   : > { %v574_v9 = vsub.f32 %v1294_v16, %v528_v8  ;;  %v1435_v10 = vsel %vm508_vm2, %v1429_v7, -inf }
 0x188   : > { %v568_v11 = vsel %vm525_vm3, %v1435_v10, -inf }
 0x189   : > { %v590_v14 = vmul.f32 1.442695, %v574_v9  ;;  %569 = vmax.xlane.f32.xlu2 %v568_v11 }
 0x18b   : > { %1061 = vpow2.f32 %v590_v14 }
 0x18c   : > { %v503_v17 = vpop.f32.mrf.mxu2 }
 0x18d   : > { %v1440_v18 = vadd.f32 %v1285_v13, %v503_v17 }
 0x18e   : > { %v531_v21 = vpop.xlane.xlu0 %530 }
 0x18f   : > { %v575_v22 = vsub.f32 %v1304_v20, %v531_v21  ;;  %v1446_v16 = vsel %vm508_vm2, %v1440_v18, -inf }
 0x190   : > { %v571_v25 = vsel %vm525_vm3, %v1446_v16, -inf }
 0x191   : > { %v1450_v26 = vpop.eup %1061  ;;  %v592_v29 = vmul.f32 1.442695, %v575_v22  ;;  %572 = vmax.xlane.f32.xlu0 %v571_v25 }
 0x192   : > { %v622_v30 = vsel %vm525_vm3, %v1450_v26, 0.0 }
 0x193   : > { %1063 = vpow2.f32 %v592_v29  ;;  %623 = vadd.xlane.f32.xlu1 %v622_v30 }
 0x196   : > { %v534_v13 = vpop.xlane.xlu1 %533 }
 0x197   : > { %v576_v20 = vsub.f32 %v1314_v24, %v534_v13 }
 0x199   : > { %v1455_v33 = vpop.eup %1063  ;;  %v594_v34 = vmul.f32 1.442695, %v576_v20 }
 0x19a   : > { %v625_v37 = vsel %vm525_vm3, %v1455_v33, 0.0 }
 0x19b   : > { %1065 = vpow2.f32 %v594_v34  ;;  %626 = vadd.xlane.f32.xlu2 %v625_v37 }
 0x19e   : > { %v537_v38 = vpop.xlane.xlu1 %536 }
 0x19f   : > { %v577_v41 = vsub.f32 %v1324_v28, %v537_v38 }
 0x1a1   : > { %v1460_v42 = vpop.eup %1065  ;;  %v596_v45 = vmul.f32 1.442695, %v577_v41 }
 0x1a2   : > { %v628_v46 = vsel %vm525_vm3, %v1460_v42, 0.0 }
 0x1a3   : > { %1067 = vpow2.f32 %v596_v45  ;;  %629 = vadd.xlane.f32.xlu0 %v628_v46 }
 0x1a6   : > { %v540_v24 = vpop.xlane.xlu2 %539 }
 0x1a7   : > { %v578_v49 = vsub.f32 %v1334_v32, %v540_v24 }
 0x1a9   : > { %v1465_v50 = vpop.eup %1067  ;;  %v598_v53 = vmul.f32 1.442695, %v578_v49 }
 0x1aa   : > { %v631_v54 = vsel %vm525_vm3, %v1465_v50, 0.0 }
 0x1ab   : > { %1069 = vpow2.f32 %v598_v53  ;;  %632 = vadd.xlane.f32.xlu1 %v631_v54 }
 0x1ae   : > { %v543_v28 = vpop.xlane.xlu2 %542 }
 0x1af   : > { %v579_v57 = vsub.f32 %v1344_v36, %v543_v28 }
 0x1b1   : > { %v1470_v58 = vpop.eup %1069  ;;  %v600_v61 = vmul.f32 1.442695, %v579_v57 }
 0x1b2   : > { %v634_v62 = vsel %vm525_vm3, %v1470_v58, 0.0 }
 0x1b3   : > { %1071 = vpow2.f32 %v600_v61  ;;  %635 = vadd.xlane.f32.xlu2 %v634_v62 }
 0x1b6   : > { %v546_v32 = vpop.xlane.xlu0 %545 }
 0x1b7   : > { %v580_v1 = vsub.f32 %v1354_v40, %v546_v32 }
 0x1b9   : > { %v1475_v2 = vpop.eup %1071  ;;  %v602_v5 = vmul.f32 1.442695, %v580_v1 }
 0x1ba   : > { %v637_v6 = vsel %vm525_vm3, %v1475_v2, 0.0 }
 0x1bb   : > { %1073 = vpow2.f32 %v602_v5  ;;  %638 = vadd.xlane.f32.xlu0 %v637_v6 }
 0x1be   : > { %v549_v36 = vpop.xlane.xlu1 %548 }
 0x1bf   : > { %v581_v8 = vsub.f32 %v1364_v44, %v549_v36 }
 0x1c1   : > { %v1480_v9 = vpop.eup %1073  ;;  %v604_v11 = vmul.f32 1.442695, %v581_v8 }
 0x1c2   : > { %v640_v14 = vsel %vm525_vm3, %v1480_v9, 0.0 }
 0x1c3   : > { %1075 = vpow2.f32 %v604_v11  ;;  %641 = vadd.xlane.f32.xlu1 %v640_v14 }
 0x1c9   : > { %v1484_v40 = vpop.eup %1075 }
 0x1ca   : > { %v643_v17 = vsel %vm525_vm3, %v1484_v40, 0.0 }
 0x1cb   : > { %644 = vadd.xlane.f32.xlu2 %v643_v17 }
 0x1cc   : > { %v552_v21 = vpop.xlane.xlu2 %551 }
 0x1cd   : > { %v582_v22 = vsub.f32 %v1374_v48, %v552_v21 }
 0x1cf   : > { %v606_v25 = vmul.f32 1.442695, %v582_v22 }
 0x1d1   : > { %1077 = vpow2.f32 %v606_v25 }
 0x1d4   : > { %v555_v44 = vpop.xlane.xlu0 %554 }
 0x1d5   : > { %v583_v29 = vsub.f32 %v1384_v52, %v555_v44 }
 0x1d7   : > { %v1490_v30 = vpop.eup %1077  ;;  %v608_v13 = vmul.f32 1.442695, %v583_v29 }
 0x1d8   : > { %v646_v20 = vsel %vm525_vm3, %v1490_v30, 0.0 }
 0x1d9   : > { %1079 = vpow2.f32 %v608_v13  ;;  %647 = vadd.xlane.f32.xlu0 %v646_v20 }
 0x1dc   : > { %v558_v34 = vpop.xlane.xlu1 %557 }
 0x1dd   : > { %v584_v37 = vsub.f32 %v1394_v56, %v558_v34 }
 0x1df   : > { %v1495_v38 = vpop.eup %1079  ;;  %v610_v41 = vmul.f32 1.442695, %v584_v37 }
 0x1e0   : > { %v649_v48 = vsel %vm525_vm3, %v1495_v38, 0.0 }
 0x1e1   : > { %1081 = vpow2.f32 %v610_v41  ;;  %650 = vadd.xlane.f32.xlu1 %v649_v48 }
 0x1e4   : > { %v561_v52 = vpop.xlane.xlu2 %560 }
 0x1e5   : > { %v585_v45 = vsub.f32 %v1404_v60, %v561_v52 }
 0x1e7   : > { %v1500_v46 = vpop.eup %1081  ;;  %v612_v24 = vmul.f32 1.442695, %v585_v45 }
 0x1e8   : > { %v652_v49 = vsel %vm525_vm3, %v1500_v46, 0.0 }
 0x1e9   : > { %1083 = vpow2.f32 %v612_v24  ;;  %653 = vadd.xlane.f32.xlu2 %v652_v49 }
 0x1ec   : > { %v564_v56 = vpop.xlane.xlu0 %563 }
 0x1ed   : > { %v586_v53 = vsub.f32 %v1414_v0, %v564_v56 }
 0x1ef   : > { %v1505_v54 = vpop.eup %1083  ;;  %v614_v28 = vmul.f32 1.442695, %v586_v53 }
 0x1f0   : > { %v655_v57 = vsel %vm525_vm3, %v1505_v54, 0.0 }
 0x1f1   : > { %1085 = vpow2.f32 %v614_v28  ;;  %656 = vadd.xlane.f32.xlu0 %v655_v57 }
 0x1f4   : > { %v567_v60 = vpop.xlane.xlu1 %566 }
 0x1f5   : > { %v587_v61 = vsub.f32 %v1424_v4, %v567_v60 }
 0x1f7   : > { %v1510_v62 = vpop.eup %1085  ;;  %v616_v32 = vmul.f32 1.442695, %v587_v61 }
 0x1f8   : > { %v658_v1 = vsel %vm525_vm3, %v1510_v62, 0.0 }
 0x1f9   : > { %1087 = vpow2.f32 %v616_v32  ;;  %659 = vadd.xlane.f32.xlu1 %v658_v1 }
 0x1fc   : > { %v570_v0 = vpop.xlane.xlu2 %569 }
 0x1fd   : > { %v588_v5 = vsub.f32 %v1435_v10, %v570_v0 }
 0x1ff   : > { %v1515_v6 = vpop.eup %1087  ;;  %v618_v36 = vmul.f32 1.442695, %v588_v5 }
 0x200   : > { %v661_v8 = vsel %vm525_vm3, %v1515_v6, 0.0 }
 0x201   : > { %1089 = vpow2.f32 %v618_v36  ;;  %662 = vadd.xlane.f32.xlu2 %v661_v8 }
 0x204   : > { %v573_v4 = vpop.xlane.xlu0 %572 }
 0x205   : > { %v589_v11 = vsub.f32 %v1446_v16, %v573_v4 }
 0x206   : > { %v624_v14 = vpop.xlane.xlu1 %623 }
 0x207   : > { %v1520_v17 = vpop.eup %1089  ;;  %v620_v21 = vmul.f32 1.442695, %v589_v11  ;;  %1091 = vrcp.f32 %v624_v14  ;;  %v681_v20 = vand.u32 2147483648, %v624_v14  ;;  %v679_v37 = vand.u32 2147483647, %v624_v14 }
 0x208   : > { %v664_v22 = vsel %vm525_vm3, %v1520_v17, 0.0  ;;  %vm675_vm5 = vweird.f32 %v624_v14 }
 0x209   : > { %1093 = vpow2.f32 %v620_v21  ;;  %665 = vadd.xlane.f32.xlu0 %v664_v22  ;;  %v682_v52 = vor.u32 1.1754944e-38, %v681_v20  ;;  %vm680_vm7 = vcmp.eq.f32.partialorder %v679_v37, 8.507059e+37 }
 0x20d   : > { %v1092_v10 = vpop.eup %1091 }
 0x20e   : > { %v671_v25 = vmul.f32 %v1092_v10, %v624_v14  ;;  %v627_v44 = vpop.xlane.xlu2 %626  ;;  %vm676_vm4 = vweird.f32 %v1092_v10 }
 0x20f   : > { %v1524_v29 = vpop.eup %1093  ;;  %1095 = vrcp.f32 %v627_v44  ;;  %vm677_vm6 = vmor %vm675_vm5, %vm676_vm4  ;;  %v696_v57 = vand.u32 2147483648, %v627_v44  ;;  %v694_v32 = vand.u32 2147483647, %v627_v44  ;;  %vm690_vm9 = vweird.f32 %v627_v44 }
 0x210   : > { %v672_v13 = vsub.f32 1.0, %v671_v25  ;;  %v667_v16 = vsel %vm525_vm3, %v1524_v29, 0.0 }
 0x211   : > { %668 = vadd.xlane.f32.xlu1 %v667_v16  ;;  %v697_v5 = vor.u32 1.1754944e-38, %v696_v57  ;;  %vm695_vm11 = vcmp.eq.f32.partialorder %v694_v32, 8.507059e+37 }
 0x212   : > { %v673_v34 = vmul.f32 %v1092_v10, %v672_v13 }
 0x214   : > { %v674_v41 = vadd.f32 %v1092_v10, %v673_v34 }
 0x215   : > { %v1096_v48 = vpop.eup %1095 }
 0x216   : > { %v678_v45 = vsel %vm677_vm6, %v1092_v10, %v674_v41  ;;  %v686_v24 = vmul.f32 %v1096_v48, %v627_v44  ;;  %v630_v49 = vpop.xlane.xlu0 %629  ;;  %vm691_vm8 = vweird.f32 %v1096_v48 }
 0x217   : > { %v683_v56 = vsel %vm680_vm7, %v682_v52, %v678_v45  ;;  %1097 = vrcp.f32 %v630_v49  ;;  %vm692_vm10 = vmor %vm690_vm9, %vm691_vm8  ;;  %v711_v14 = vand.u32 2147483648, %v630_v49  ;;  %v709_v10 = vand.u32 2147483647, %v630_v49 }
 0x218   : > { %v684_v53 = vmul.f32 %v1450_v26, %v683_v56  ;;  %v687_v28 = vsub.f32 1.0, %v686_v24  ;;  %vm705_vm13 = vweird.f32 %v630_v49 }
 0x219   : > { %v712_v13 = vor.u32 1.1754944e-38, %v711_v14  ;;  %vm710_vm15 = vcmp.eq.f32.partialorder %v709_v10, 8.507059e+37 }
 0x21a   : > { %v910_v60 = vsel %vm508_vm2, %v684_v53, %v1289_v15  ;;  %v688_v61 = vmul.f32 %v1096_v48, %v687_v28 }
 0x21b   : > { %926 = vst.msk [vmem:[%s1533_s29] sm:$0xff] %vm525_vm3, %v910_v60 }
 0x21c   : > { %v689_v1 = vadd.f32 %v1096_v48, %v688_v61 }
 0x21d   : > { %v1098_v0 = vpop.eup %1097 }
 0x21e   : > { %v693_v36 = vsel %vm692_vm10, %v1096_v48, %v689_v1  ;;  %v701_v26 = vmul.f32 %v1098_v0, %v630_v49  ;;  %v633_v8 = vpop.xlane.xlu1 %632  ;;  %vm706_vm12 = vweird.f32 %v1098_v0 }
 0x21f   : > { %v698_v4 = vsel %vm695_vm11, %v697_v5, %v693_v36  ;;  %1099 = vrcp.f32 %v633_v8  ;;  %vm707_vm14 = vmor %vm705_vm13, %vm706_vm12  ;;  %v726_v41 = vand.u32 2147483648, %v633_v8  ;;  %v724_v45 = vand.u32 2147483647, %v633_v8 }
 0x220   : > { %v699_v11 = vmul.f32 %v1455_v33, %v698_v4  ;;  %v702_v15 = vsub.f32 1.0, %v701_v26  ;;  %vm720_vm1 = vweird.f32 %v633_v8 }
 0x221   : > { %v727_v56 = vor.u32 1.1754944e-38, %v726_v41  ;;  %vm725_vm5 = vcmp.eq.f32.partialorder %v724_v45, 8.507059e+37 }
 0x222   : > { %v911_v21 = vsel %vm508_vm2, %v699_v11, %v1299_v19  ;;  %v703_v22 = vmul.f32 %v1098_v0, %v702_v15 }
 0x223   : > { %927 = vst.msk [vmem:[%s1533_s29 + $0x8] sm:$0xff] %vm525_vm3, %v911_v21 }
 0x224   : > { %v704_v25 = vadd.f32 %v1098_v0, %v703_v22 }
 0x225   : > { %v1100_v44 = vpop.eup %1099 }
 0x226   : > { %v708_v16 = vsel %vm707_vm14, %v1098_v0, %v704_v25  ;;  %v716_v33 = vmul.f32 %v1100_v44, %v633_v8  ;;  %v636_v20 = vpop.xlane.xlu2 %635  ;;  %vm721_vm0 = vweird.f32 %v1100_v44 }
 0x227   : > { %v713_v34 = vsel %vm710_vm15, %v712_v13, %v708_v16  ;;  %1101 = vrcp.f32 %v636_v20  ;;  %vm722_vm4 = vmor %vm720_vm1, %vm721_vm0  ;;  %v741_v61 = vand.u32 2147483648, %v636_v20  ;;  %v739_v0 = vand.u32 2147483647, %v636_v20 }
 0x228   : > { %v714_v37 = vmul.f32 %v1460_v42, %v713_v34  ;;  %v717_v19 = vsub.f32 1.0, %v716_v33  ;;  %vm735_vm7 = vweird.f32 %v636_v20 }
 0x229   : > { %v742_v26 = vor.u32 1.1754944e-38, %v741_v61  ;;  %vm740_vm9 = vcmp.eq.f32.partialorder %v739_v0, 8.507059e+37 }
 0x22a   : > { %v912_v48 = vsel %vm508_vm2, %v714_v37, %v1309_v23  ;;  %v718_v52 = vmul.f32 %v1100_v44, %v717_v19 }
 0x22b   : > { %928 = vst.msk [vmem:[%s1533_s29 + $0x10] sm:$0xff] %vm525_vm3, %v912_v48 }
 0x22c   : > { %v719_v24 = vadd.f32 %v1100_v44, %v718_v52 }
 0x22d   : > { %v1102_v49 = vpop.eup %1101 }
 0x22e   : > { %v723_v53 = vsel %vm722_vm4, %v1100_v44, %v719_v24  ;;  %v731_v42 = vmul.f32 %v1102_v49, %v636_v20  ;;  %v639_v28 = vpop.xlane.xlu0 %638  ;;  %vm736_vm6 = vweird.f32 %v1102_v49 }
 0x22f   : > { %v728_v57 = vsel %vm725_vm5, %v727_v56, %v723_v53  ;;  %1103 = vrcp.f32 %v639_v28  ;;  %vm737_vm8 = vmor %vm735_vm7, %vm736_vm6  ;;  %v756_v14 = vand.u32 2147483648, %v639_v28  ;;  %v754_v10 = vand.u32 2147483647, %v639_v28 }
 0x230   : > { %v729_v60 = vmul.f32 %v1465_v50, %v728_v57  ;;  %v732_v23 = vsub.f32 1.0, %v731_v42  ;;  %vm750_vm11 = vweird.f32 %v639_v28 }
 0x231   : > { %v757_v13 = vor.u32 1.1754944e-38, %v756_v14  ;;  %vm755_vm13 = vcmp.eq.f32.partialorder %v754_v10, 8.507059e+37 }
 0x232   : > { %v913_v32 = vsel %vm508_vm2, %v729_v60, %v1319_v27  ;;  %v733_v1 = vmul.f32 %v1102_v49, %v732_v23 }
 0x233   : > { %929 = vst.msk [vmem:[%s1533_s29 + $0x18] sm:$0xff] %vm525_vm3, %v913_v32 }
 0x234   : > { %v734_v5 = vadd.f32 %v1102_v49, %v733_v1 }
 0x235   : > { %v1104_v36 = vpop.eup %1103 }
 0x236   : > { %v738_v8 = vsel %vm737_vm8, %v1102_v49, %v734_v5  ;;  %v746_v50 = vmul.f32 %v1104_v36, %v639_v28  ;;  %v642_v4 = vpop.xlane.xlu1 %641  ;;  %vm751_vm10 = vweird.f32 %v1104_v36 }
 0x237   : > { %v743_v11 = vsel %vm740_vm9, %v742_v26, %v738_v8  ;;  %1105 = vrcp.f32 %v642_v4  ;;  %vm752_vm12 = vmor %vm750_vm11, %vm751_vm10  ;;  %v771_v37 = vand.u32 2147483648, %v642_v4  ;;  %v769_v48 = vand.u32 2147483647, %v642_v4 }
 0x238   : > { %v744_v15 = vmul.f32 %v1470_v58, %v743_v11  ;;  %v747_v27 = vsub.f32 1.0, %v746_v50  ;;  %vm765_vm15 = vweird.f32 %v642_v4 }
 0x239   : > { %v772_v24 = vor.u32 1.1754944e-38, %v771_v37  ;;  %vm770_vm1 = vcmp.eq.f32.partialorder %v769_v48, 8.507059e+37 }
 0x23a   : > { %v914_v21 = vsel %vm508_vm2, %v744_v15, %v1329_v31  ;;  %v748_v22 = vmul.f32 %v1104_v36, %v747_v27 }
 0x23b   : > { %930 = vst.msk [vmem:[%s1533_s29 + $0x20] sm:$0xff] %vm525_vm3, %v914_v21 }
 0x23c   : > { %v749_v25 = vadd.f32 %v1104_v36, %v748_v22 }
 0x23d   : > { %v1106_v44 = vpop.eup %1105 }
 0x23e   : > { %v753_v16 = vsel %vm752_vm12, %v1104_v36, %v749_v25  ;;  %v761_v58 = vmul.f32 %v1106_v44, %v642_v4  ;;  %v645_v33 = vpop.xlane.xlu2 %644  ;;  %vm766_vm14 = vweird.f32 %v1106_v44 }
 0x23f   : > { %v758_v20 = vsel %vm755_vm13, %v757_v13, %v753_v16  ;;  %1107 = vrcp.f32 %v645_v33  ;;  %vm767_vm0 = vmor %vm765_vm15, %vm766_vm14  ;;  %v786_v28 = vand.u32 2147483648, %v645_v33  ;;  %v784_v60 = vand.u32 2147483647, %v645_v33 }
 0x240   : > { %v759_v34 = vmul.f32 %v1475_v2, %v758_v20  ;;  %v762_v31 = vsub.f32 1.0, %v761_v58  ;;  %vm780_vm5 = vweird.f32 %v645_v33 }
 0x241   : > { %v787_v32 = vor.u32 1.1754944e-38, %v786_v28  ;;  %vm785_vm7 = vcmp.eq.f32.partialorder %v784_v60, 8.507059e+37 }
 0x242   : > { %v915_v19 = vsel %vm508_vm2, %v759_v34, %v1339_v35  ;;  %v763_v41 = vmul.f32 %v1106_v44, %v762_v31 }
 0x243   : > { %931 = vst.msk [vmem:[%s1533_s29 + $0x28] sm:$0xff] %vm525_vm3, %v915_v19 }
 0x244   : > { %v764_v52 = vadd.f32 %v1106_v44, %v763_v41 }
 0x245   : > { %v1108_v45 = vpop.eup %1107 }
 0x246   : > { %v768_v49 = vsel %vm767_vm0, %v1106_v44, %v764_v52  ;;  %v776_v2 = vmul.f32 %v1108_v45, %v645_v33  ;;  %vm781_vm4 = vweird.f32 %v1108_v45 }
 0x247   : > { %v773_v56 = vsel %vm770_vm1, %v772_v24, %v768_v49  ;;  %vm782_vm6 = vmor %vm780_vm5, %vm781_vm4 }
 0x248   : > { %v774_v53 = vmul.f32 %v1480_v9, %v773_v56  ;;  %v777_v42 = vsub.f32 1.0, %v776_v2 }
 0x24a   : > { %v916_v35 = vsel %vm508_vm2, %v774_v53, %v1349_v39  ;;  %v778_v57 = vmul.f32 %v1108_v45, %v777_v42 }
 0x24b   : > { %932 = vst.msk [vmem:[%s1533_s29 + $0x30] sm:$0xff] %vm525_vm3, %v916_v35 }
 0x24c   : > { %v779_v23 = vadd.f32 %v1108_v45, %v778_v57  ;;  %v648_v61 = vpop.xlane.xlu0 %647 }
 0x24d   : > { %1109 = vrcp.f32 %v648_v61  ;;  %v801_v50 = vand.u32 2147483648, %v648_v61  ;;  %v799_v11 = vand.u32 2147483647, %v648_v61  ;;  %vm795_vm9 = vweird.f32 %v648_v61 }
 0x24e   : > { %v783_v1 = vsel %vm782_vm6, %v1108_v45, %v779_v23 }
 0x24f   : > { %v788_v9 = vsel %vm785_vm7, %v787_v32, %v783_v1  ;;  %vm800_vm11 = vcmp.eq.f32.partialorder %v799_v11, 8.507059e+37 }
 0x250   : > { %v789_v0 = vmul.f32 %v1484_v40, %v788_v9  ;;  %v802_v40 = vor.u32 1.1754944e-38, %v801_v50 }
 0x252   : > { %v917_v39 = vsel %vm508_vm2, %v789_v0, %v1359_v43 }
 0x253   : > { %v1110_v5 = vpop.eup %1109  ;;  %933 = vst.msk [vmem:[%s1533_s29 + $0x38] sm:$0xff] %vm525_vm3, %v917_v39 }
 0x254   : > { %v791_v36 = vmul.f32 %v1110_v5, %v648_v61  ;;  %v651_v26 = vpop.xlane.xlu1 %650  ;;  %vm796_vm8 = vweird.f32 %v1110_v5 }
 0x255   : > { %1111 = vrcp.f32 %v651_v26  ;;  %vm797_vm10 = vmor %vm795_vm9, %vm796_vm8  ;;  %v816_v44 = vand.u32 2147483648, %v651_v26  ;;  %v814_v58 = vand.u32 2147483647, %v651_v26  ;;  %vm810_vm13 = vweird.f32 %v651_v26 }
 0x256   : > { %v792_v8 = vsub.f32 1.0, %v791_v36 }
 0x257   : > { %v817_v34 = vor.u32 1.1754944e-38, %v816_v44  ;;  %vm815_vm15 = vcmp.eq.f32.partialorder %v814_v58, 8.507059e+37 }
 0x258   : > { %v793_v4 = vmul.f32 %v1110_v5, %v792_v8 }
 0x25a   : > { %v794_v15 = vadd.f32 %v1110_v5, %v793_v4 }
 0x25b   : > { %v1112_v27 = vpop.eup %1111 }
 0x25c   : > { %v798_v14 = vsel %vm797_vm10, %v1110_v5, %v794_v15  ;;  %v806_v43 = vmul.f32 %v1112_v27, %v651_v26  ;;  %v654_v21 = vpop.xlane.xlu2 %653  ;;  %vm811_vm12 = vweird.f32 %v1112_v27 }
 0x25d   : > { %v803_v22 = vsel %vm800_vm11, %v802_v40, %v798_v14  ;;  %1113 = vrcp.f32 %v654_v21  ;;  %vm812_vm14 = vmor %vm810_vm13, %vm811_vm12  ;;  %v831_v48 = vand.u32 2147483648, %v654_v21  ;;  %v829_v24 = vand.u32 2147483647, %v654_v21 }
 0x25e   : > { %v804_v10 = vmul.f32 %v1490_v30, %v803_v22  ;;  %v807_v25 = vsub.f32 1.0, %v806_v43  ;;  %vm825_vm1 = vweird.f32 %v654_v21 }
 0x25f   : > { %v832_v56 = vor.u32 1.1754944e-38, %v831_v48  ;;  %vm830_vm5 = vcmp.eq.f32.partialorder %v829_v24, 8.507059e+37 }
 0x260   : > { %v918_v13 = vsel %vm508_vm2, %v804_v10, %v1369_v47  ;;  %v808_v16 = vmul.f32 %v1112_v27, %v807_v25 }
 0x261   : > { %934 = vst.msk [vmem:[%s1533_s29 + $0x40] sm:$0xff] %vm525_vm3, %v918_v13 }
 0x262   : > { %v809_v33 = vadd.f32 %v1112_v27, %v808_v16 }
 0x263   : > { %v1114_v20 = vpop.eup %1113 }
 0x264   : > { %v813_v31 = vsel %vm812_vm14, %v1112_v27, %v809_v33  ;;  %v821_v30 = vmul.f32 %v1114_v20, %v654_v21  ;;  %v657_v37 = vpop.xlane.xlu0 %656  ;;  %vm826_vm0 = vweird.f32 %v1114_v20 }
 0x265   : > { %v818_v19 = vsel %vm815_vm15, %v817_v34, %v813_v31  ;;  %1115 = vrcp.f32 %v657_v37  ;;  %vm827_vm4 = vmor %vm825_vm1, %vm826_vm0  ;;  %v846_v57 = vand.u32 2147483648, %v657_v37  ;;  %v844_v61 = vand.u32 2147483647, %v657_v37 }
 0x266   : > { %v819_v41 = vmul.f32 %v1495_v38, %v818_v19  ;;  %v822_v47 = vsub.f32 1.0, %v821_v30  ;;  %vm840_vm7 = vweird.f32 %v657_v37 }
 0x267   : > { %v847_v9 = vor.u32 1.1754944e-38, %v846_v57  ;;  %vm845_vm9 = vcmp.eq.f32.partialorder %v844_v61, 8.507059e+37 }
 0x268   : > { %v919_v52 = vsel %vm508_vm2, %v819_v41, %v1379_v51  ;;  %v823_v45 = vmul.f32 %v1114_v20, %v822_v47 }
 0x269   : > { %935 = vst.msk [vmem:[%s1533_s29 + $0x48] sm:$0xff] %vm525_vm3, %v919_v52 }
 0x26a   : > { %v824_v49 = vadd.f32 %v1114_v20, %v823_v45 }
 0x26b   : > { %v1116_v2 = vpop.eup %1115 }
 0x26c   : > { %v828_v53 = vsel %vm827_vm4, %v1114_v20, %v824_v49  ;;  %v836_v38 = vmul.f32 %v1116_v2, %v657_v37  ;;  %v660_v42 = vpop.xlane.xlu1 %659  ;;  %vm841_vm6 = vweird.f32 %v1116_v2 }
 0x26d   : > { %v833_v28 = vsel %vm830_vm5, %v832_v56, %v828_v53  ;;  %1117 = vrcp.f32 %v660_v42  ;;  %vm842_vm8 = vmor %vm840_vm7, %vm841_vm6  ;;  %v861_v26 = vand.u32 2147483648, %v660_v42  ;;  %v859_v4 = vand.u32 2147483647, %v660_v42 }
 0x26e   : > { %v834_v35 = vmul.f32 %v1500_v46, %v833_v28  ;;  %v837_v51 = vsub.f32 1.0, %v836_v38  ;;  %vm855_vm11 = vweird.f32 %v660_v42 }
 0x26f   : > { %v862_v27 = vor.u32 1.1754944e-38, %v861_v26  ;;  %vm860_vm13 = vcmp.eq.f32.partialorder %v859_v4, 8.507059e+37 }
 0x270   : > { %v920_v60 = vsel %vm508_vm2, %v834_v35, %v1389_v55  ;;  %v838_v23 = vmul.f32 %v1116_v2, %v837_v51 }
 0x271   : > { %936 = vst.msk [vmem:[%s1533_s29 + $0x50] sm:$0xff] %vm525_vm3, %v920_v60 }
 0x272   : > { %v839_v32 = vadd.f32 %v1116_v2, %v838_v23 }
 0x273   : > { %v1118_v1 = vpop.eup %1117 }
 0x274   : > { %v843_v0 = vsel %vm842_vm8, %v1116_v2, %v839_v32  ;;  %v851_v46 = vmul.f32 %v1118_v1, %v660_v42  ;;  %v663_v39 = vpop.xlane.xlu2 %662  ;;  %vm856_vm10 = vweird.f32 %v1118_v1 }
 0x275   : > { %v848_v5 = vsel %vm845_vm9, %v847_v9, %v843_v0  ;;  %1119 = vrcp.f32 %v663_v39  ;;  %vm857_vm12 = vmor %vm855_vm11, %vm856_vm10  ;;  %v876_v22 = vand.u32 2147483648, %v663_v39  ;;  %v874_v44 = vand.u32 2147483647, %v663_v39 }
 0x276   : > { %v849_v36 = vmul.f32 %v1505_v54, %v848_v5  ;;  %v852_v55 = vsub.f32 1.0, %v851_v46  ;;  %vm870_vm15 = vweird.f32 %v663_v39 }
 0x277   : > { %v877_v58 = vor.u32 1.1754944e-38, %v876_v22  ;;  %vm875_vm1 = vcmp.eq.f32.partialorder %v874_v44, 8.507059e+37 }
 0x278   : > { %v921_v8 = vsel %vm508_vm2, %v849_v36, %v1399_v59  ;;  %v853_v50 = vmul.f32 %v1118_v1, %v852_v55 }
 0x279   : > { %937 = vst.msk [vmem:[%s1533_s29 + $0x58] sm:$0xff] %vm525_vm3, %v921_v8 }
 0x27a   : > { %v854_v11 = vadd.f32 %v1118_v1, %v853_v50 }
 0x27b   : > { %v1120_v15 = vpop.eup %1119 }
 0x27c   : > { %v858_v40 = vsel %vm857_vm12, %v1118_v1, %v854_v11  ;;  %v866_v54 = vmul.f32 %v1120_v15, %v663_v39  ;;  %v666_v14 = vpop.xlane.xlu0 %665  ;;  %vm871_vm14 = vweird.f32 %v1120_v15 }
 0x27d   : > { %v863_v43 = vsel %vm860_vm13, %v862_v27, %v858_v40  ;;  %1121 = vrcp.f32 %v666_v14  ;;  %vm872_vm0 = vmor %vm870_vm15, %vm871_vm14  ;;  %v891_v30 = vand.u32 2147483648, %v666_v14  ;;  %v889_v41 = vand.u32 2147483647, %v666_v14 }
 0x27e   : > { %v864_v21 = vmul.f32 %v1510_v62, %v863_v43  ;;  %v867_v59 = vsub.f32 1.0, %v866_v54  ;;  %vm885_vm5 = vweird.f32 %v666_v14 }
 0x27f   : > { %v892_v52 = vor.u32 1.1754944e-38, %v891_v30  ;;  %vm890_vm7 = vcmp.eq.f32.partialorder %v889_v41, 8.507059e+37 }
 0x280   : > { %v922_v10 = vsel %vm508_vm2, %v864_v21, %v1409_v63  ;;  %v868_v25 = vmul.f32 %v1120_v15, %v867_v59 }
 0x281   : > { %938 = vst.msk [vmem:[%s1533_s29 + $0x60] sm:$0xff] %vm525_vm3, %v922_v10 }
 0x282   : > { %v869_v13 = vadd.f32 %v1120_v15, %v868_v25 }
 0x283   : > { %v1122_v16 = vpop.eup %1121 }
 0x284   : > { %v873_v33 = vsel %vm872_vm0, %v1120_v15, %v869_v13  ;;  %v881_v62 = vmul.f32 %v1122_v16, %v666_v14  ;;  %v669_v20 = vpop.xlane.xlu1 %668  ;;  %vm886_vm4 = vweird.f32 %v1122_v16 }
 0x285   : > { %v878_v34 = vsel %vm875_vm1, %v877_v58, %v873_v33  ;;  %1123 = vrcp.f32 %v669_v20  ;;  %vm887_vm6 = vmor %vm885_vm5, %vm886_vm4  ;;  %v904_v38 = vand.u32 2147483647, %v669_v20  ;;  %vm900_vm9 = vweird.f32 %v669_v20 }
 0x286   : > { %v879_v31 = vmul.f32 %v1515_v6, %v878_v34  ;;  %v882_v63 = vsub.f32 1.0, %v881_v62 }
 0x287   : > { %vm905_vm11 = vcmp.eq.f32.partialorder %v904_v38, 8.507059e+37 }
 0x288   : > { %v923_v37 = vsel %vm508_vm2, %v879_v31, %v1419_v3  ;;  %v883_v19 = vmul.f32 %v1122_v16, %v882_v63  ;;  %v906_v3 = vand.u32 2147483648, %v669_v20 }
 0x289   : > { %939 = vst.msk [vmem:[%s1533_s29 + $0x68] sm:$0xff] %vm525_vm3, %v923_v37 }
 0x28a   : > { %v884_v47 = vadd.f32 %v1122_v16, %v883_v19  ;;  %v907_v28 = vor.u32 1.1754944e-38, %v906_v3 }
 0x28b   : > { %v1124_v48 = vpop.eup %1123 }
 0x28c   : > { %v888_v45 = vsel %vm887_vm6, %v1122_v16, %v884_v47  ;;  %v896_v6 = vmul.f32 %v1124_v48, %v669_v20  ;;  %vm901_vm8 = vweird.f32 %v1124_v48 }
 0x28d   : > { %v893_v24 = vsel %vm890_vm7, %v892_v52, %v888_v45  ;;  %vm902_vm10 = vmor %vm900_vm9, %vm901_vm8 }
 0x28e   : > { %v894_v49 = vmul.f32 %v1520_v17, %v893_v24  ;;  %v897_v2 = vsub.f32 1.0, %v896_v6 }
 0x290   : > { %v924_v56 = vsel %vm508_vm2, %v894_v49, %v1429_v7  ;;  %v898_v53 = vmul.f32 %v1124_v48, %v897_v2 }
 0x291   : > { %940 = vst.msk [vmem:[%s1533_s29 + $0x70] sm:$0xff] %vm525_vm3, %v924_v56 }
 0x292   : > { %v899_v42 = vadd.f32 %v1124_v48, %v898_v53 }
 0x294   : > { %v903_v35 = vsel %vm902_vm10, %v1124_v48, %v899_v42 }
 0x295   : > { %v908_v51 = vsel %vm905_vm11, %v907_v28, %v903_v35 }
 0x296   : > { %v909_v17 = vmul.f32 %v1524_v29, %v908_v51 }
 0x298   : > { %v925_v57 = vsel %vm508_vm2, %v909_v17, %v1440_v18 }
 0x299   : > { %941 = vst.msk [vmem:[%s1533_s29 + $0x78] sm:$0xff] %vm525_vm3, %v925_v57 }
 0x29a PF: > { %s15_s18 = sadd.s32 1, %s1131_s18  }
 0x29b   : > { %p12_p4 = scmp.ge.s32.totalorder %s15_s18, 4  }
 0x29d   :  { %14 = sbr.rel (!%p12_p4) target bundleno = 1 (0x1), region = 70 }

</bundles_post_ra>
